<compile_context>
chip_gen: v7x
topology: tpu7x:2x2x1
jax: 0.10.0
libtpu: 0.0.40
codegen_flags: <defaults>
</compile_context>

<pallas_src>
import functools

import jax
import jax.numpy as jnp
from jax.experimental import pallas as pl
from jax.experimental.pallas import tpu as pltpu

HIDDEN = 64
_PACK = 8        # batch rows folded into the lane dim for lane-dense I/O
_GRANULE = 16    # row-tile granularity (bf16 sublane packing friendly)


def _mlp_kernel(x_ref, w1_ref, b1_ref, w2_ref, b2_ref, o_ref):
    # x_ref: (tb, Din) f32   w1_ref: (Din, H) bf16   b1_ref: (1, H) f32
    # w2_ref: (H, E)   bf16  b2_ref: (1, E)  f32     o_ref: (tb, E) f32/bf16
    x = x_ref[...].astype(w1_ref.dtype)                       # f32 -> bf16 on idle VPU slots
    h = jnp.dot(x, w1_ref[...], preferred_element_type=jnp.float32)   # MXU, f32 acc
    h = jnp.maximum(h + b1_ref[...], 0.0)                             # bias + ReLU in f32
    y = jnp.dot(h.astype(w2_ref.dtype), w2_ref[...],
                preferred_element_type=jnp.float32)                   # MXU, f32 acc
    o_ref[...] = (y + b2_ref[...]).astype(o_ref.dtype)


def _round_up(n, m):
    return ((n + m - 1) // m) * m


def _vmem_limit_bytes():
    """Scoped VMEM limit derived from the actual generation (v5e/v6e: 128 MiB, v7x: 64 MiB)."""
    try:
        phys = int(pltpu.get_tpu_info().vmem_capacity_bytes)
    except Exception:
        phys = 64 * 1024 * 1024                 # conservative (v7x per-core) fallback
    return max(32 * 1024 * 1024, (phys * 3) // 4)


def _pick_tile_rows(rows, din, eout, out_itemsize, weight_bytes, vmem_limit, max_rows):
    """Biggest row tile that fits VMEM; >=2 grid steps when there is enough work (v7x megacore)."""
    tile_budget = max((vmem_limit - 2 * weight_bytes) // 2, 1 << 20)
    per_row = 2 * (din * 4 + eout * out_itemsize)          # double-buffered f32 x + out tiles
    cap = max(_GRANULE, (tile_budget // per_row) // _GRANULE * _GRANULE)
    if max_rows is not None:
        cap = min(cap, max(_GRANULE, (max_rows // _GRANULE) * _GRANULE))
    if rows >= 4 * _GRANULE:
        cap = min(cap, _round_up(pl.cdiv(rows, 2), _GRANULE))   # guarantee >= 2 grid steps
    # Either a multiple of 16 (< rows) or exactly the full row count — both satisfy BlockSpec rules.
    return rows if rows <= cap else cap


def _mlp_pallas(x2, w1b, b1b, w2b, b2b, out_dtype, max_rows):
    rows, din = x2.shape
    h = w1b.shape[1]
    eout = w2b.shape[1]
    out_itemsize = jnp.dtype(out_dtype).itemsize
    weight_bytes = (w1b.size * w1b.dtype.itemsize + w2b.size * w2b.dtype.itemsize
                    + b1b.size * 4 + b2b.size * 4)
    vmem_limit = _vmem_limit_bytes()
    tb = _pick_tile_rows(rows, din, eout, out_itemsize, weight_bytes, vmem_limit, max_rows)
    grid = (pl.cdiv(rows, tb),)

    flops = 2 * rows * (din * h + h * eout)
    bytes_accessed = rows * din * 4 + rows * eout * out_itemsize + weight_bytes

    return pl.pallas_call(
        _mlp_kernel,
        out_shape=jax.ShapeDtypeStruct((rows, eout), out_dtype),
        grid_spec=pltpu.PrefetchScalarGridSpec(
            num_scalar_prefetch=0,
            grid=grid,
            in_specs=[
                pl.BlockSpec((tb, din), lambda i: (i, 0)),   # x: tiled over batch, f32
                pl.BlockSpec((din, h), lambda i: (0, 0)),    # w1: resident, bf16
                pl.BlockSpec((1, h), lambda i: (0, 0)),      # b1: resident, f32
                pl.BlockSpec((h, eout), lambda i: (0, 0)),   # w2: resident, bf16
                pl.BlockSpec((1, eout), lambda i: (0, 0)),   # b2: resident, f32
            ],
            out_specs=pl.BlockSpec((tb, eout), lambda i: (i, 0)),
        ),
        compiler_params=pltpu.CompilerParams(
            dimension_semantics=("parallel",),
            vmem_limit_bytes=int(vmem_limit),
        ),
        cost_estimate=pl.CostEstimate(
            flops=int(flops), transcendentals=0, bytes_accessed=int(bytes_accessed)),
    )(x2, w1b, b1b, w2b, b2b)


@functools.partial(jax.jit, static_argnames=("block_b", "out_dtype"))
def embedding_net_forward(x, w1, b1, w2, b2, *, block_b=None, out_dtype=jnp.float32):
    """EmbeddingNet forward: ReLU(x @ w1 + b1) @ w2 + b2.

    x: (B, D_in) f32.  w1: (D_in, 64), b1: (64,), w2: (64, E), b2: (E,)  (nn.Linear transposed).
    """
    B, D_in = x.shape
    Din_w, H = w1.shape
    H2, E = w2.shape
    assert Din_w == D_in and H2 == H

    x = jnp.asarray(x, jnp.float32)
    w1f = jnp.asarray(w1, jnp.float32).reshape(D_in, H)
    w2f = jnp.asarray(w2, jnp.float32).reshape(H, E)
    b1f = jnp.asarray(b1, jnp.float32).reshape(1, H)
    b2f = jnp.asarray(b2, jnp.float32).reshape(1, E)

    # Lane-dense packing: fold 8 batch rows into the lane dim (free bitcast reshape of x/out,
    # block-diagonal weights). Gated so the 8x weight blowup stays small and only when B % 8 == 0
    # (so no pad copy is ever needed).
    pack_ok = (B % _PACK == 0 and B >= _PACK
               and D_in * H * _PACK * _PACK * 2 <= (8 << 20)
               and H * E * _PACK * _PACK * 2 <= (8 << 20))

    if pack_ok:
        eye = jnp.eye(_PACK, dtype=jnp.float32)
        w1b = jnp.kron(eye, w1f).astype(jnp.bfloat16)        # (8*D_in, 8*H) block-diagonal
        w2b = jnp.kron(eye, w2f).astype(jnp.bfloat16)        # (8*H, 8*E)   block-diagonal
        b1b = jnp.tile(b1f, (1, _PACK))                      # (1, 8*H)
        b2b = jnp.tile(b2f, (1, _PACK))                      # (1, 8*E)
        x2 = x.reshape(B // _PACK, _PACK * D_in)             # free row-major reshape
        max_rows = None if block_b is None else max(1, block_b // _PACK)
        out2 = _mlp_pallas(x2, w1b, b1b, w2b, b2b, out_dtype, max_rows)
        return out2.reshape(B, E)                            # free row-major reshape back
    else:
        w1b = w1f.astype(jnp.bfloat16)
        w2b = w2f.astype(jnp.bfloat16)
        return _mlp_pallas(x, w1b, b1f, w2b, b2f, out_dtype, block_b)


def init_params(key, input_dim, embed_dim=16, hidden=HIDDEN):
    """Mirror nn.Linear's uniform(-1/sqrt(fan_in), 1/sqrt(fan_in)); weights in (in, out) layout."""
    k1, k2, k3, k4 = jax.random.split(key, 4)
    lim1 = 1.0 / jnp.sqrt(jnp.float32(input_dim))
    lim2 = 1.0 / jnp.sqrt(jnp.float32(hidden))
    w1 = jax.random.uniform(k1, (input_dim, hidden), jnp.float32, -lim1, lim1)
    b1 = jax.random.uniform(k2, (hidden,), jnp.float32, -lim1, lim1)
    w2 = jax.random.uniform(k3, (hidden, embed_dim), jnp.float32, -lim2, lim2)
    b2 = jax.random.uniform(k4, (embed_dim,), jnp.float32, -lim2, lim2)
    return w1, b1, w2, b2


def _reference_bf16(x, w1, b1, w2, b2):
    """Same math as the kernel (bf16 MXU inputs, f32 accumulate/epilogue)."""
    h = jnp.dot(x.astype(jnp.bfloat16), w1.astype(jnp.bfloat16),
                preferred_element_type=jnp.float32) + b1.reshape(1, -1)
    h = jnp.maximum(h, 0.0)
    return jnp.dot(h.astype(jnp.bfloat16), w2.astype(jnp.bfloat16),
                   preferred_element_type=jnp.float32) + b2.reshape(1, -1)


def _reference_f32(x, w1, b1, w2, b2):
    h = jnp.maximum(x @ w1 + b1.reshape(1, -1), 0.0)
    return h @ w2 + b2.reshape(1, -1)


if __name__ == "__main__":
    key = jax.random.PRNGKey(0)
    kx, kp, kx2, kx3 = jax.random.split(key, 4)

    input_dim, embed_dim = 32, 16
    w1, b1, w2, b2 = init_params(kp, input_dim, embed_dim)

    # Case 1: small batch, multiple of 8 -> lane-dense packed path, single grid step.
    x = jax.random.normal(kx, (8, input_dim), jnp.float32)
    out = jax.block_until_ready(embedding_net_forward(x, w1, b1, w2, b2))
    assert out.shape == (8, embed_dim)
    assert jnp.allclose(out, _reference_bf16(x, w1, b1, w2, b2), atol=2e-3, rtol=2e-3)
    assert jnp.allclose(out, _reference_f32(x, w1, b1, w2, b2), atol=5e-2, rtol=5e-2)

    # Case 2: batch not a multiple of 8 -> unpacked fallback, 2 grid steps + ragged last block.
    x2 = jax.random.normal(kx2, (300, input_dim), jnp.float32)
    out2 = jax.block_until_ready(embedding_net_forward(x2, w1, b1, w2, b2))
    assert out2.shape == (300, embed_dim)
    assert jnp.allclose(out2, _reference_bf16(x2, w1, b1, w2, b2), atol=2e-3, rtol=2e-3)

    # Case 3: packed path with multiple grid steps and a ragged last block (1000/8 = 125 rows).
    x3 = jax.random.normal(kx3, (1000, input_dim), jnp.float32)
    out3 = jax.block_until_ready(embedding_net_forward(x3, w1, b1, w2, b2))
    assert out3.shape == (1000, embed_dim)
    assert jnp.allclose(out3, _reference_bf16(x3, w1, b1, w2, b2), atol=2e-3, rtol=2e-3)

    # Case 4: optional bf16 output.
    out4 = jax.block_until_ready(
        embedding_net_forward(x3, w1, b1, w2, b2, out_dtype=jnp.bfloat16))
    assert out4.dtype == jnp.bfloat16
    assert jnp.allclose(out4.astype(jnp.float32),
                        _reference_bf16(x3, w1, b1, w2, b2), atol=2e-2, rtol=2e-2)

    print("KERNEL_OK")
</pallas_src>

<mosaic_0001>
module attributes {stable_mosaic.version = 11 : i64} {
  func.func @_mlp_kernel(%arg0: i32, %arg1: memref<1x256xf32, #tpu.memory_space<vmem>>, %arg2: memref<256x512xbf16, #tpu.memory_space<vmem>>, %arg3: memref<1x512xf32, #tpu.memory_space<vmem>>, %arg4: memref<512x128xbf16, #tpu.memory_space<vmem>>, %arg5: memref<1x128xf32, #tpu.memory_space<vmem>>, %arg6: memref<1x128xf32, #tpu.memory_space<vmem>>) attributes {dimension_semantics = [#tpu.dimension_semantics<parallel>], iteration_bounds = array<i64: 1>, scalar_prefetch = 0 : i64, scratch_operands = 0 : i64, tpu.core_type = #tpu.core_type<tc>, window_params = [{transform_indices = @transform_0, window_bounds = array<i64: 1, 256>}, {pipeline_mode = #tpu.pipeline_mode<synchronous>, transform_indices = @transform_1, window_bounds = array<i64: 256, 512>}, {pipeline_mode = #tpu.pipeline_mode<synchronous>, transform_indices = @transform_2, window_bounds = array<i64: 1, 512>}, {pipeline_mode = #tpu.pipeline_mode<synchronous>, transform_indices = @transform_3, window_bounds = array<i64: 512, 128>}, {pipeline_mode = #tpu.pipeline_mode<synchronous>, transform_indices = @transform_4, window_bounds = array<i64: 1, 128>}, {transform_indices = @transform_5, window_bounds = array<i64: 1, 128>}]} {
    %c0 = arith.constant 0 : index
    %c0_0 = arith.constant 0 : index
    %0 = vector.load %arg1[%c0, %c0_0] : memref<1x256xf32, #tpu.memory_space<vmem>>, vector<1x256xf32>
    %1 = arith.truncf %0 : vector<1x256xf32> to vector<1x256xbf16>
    %c0_1 = arith.constant 0 : index
    %c0_2 = arith.constant 0 : index
    %2 = vector.load %arg2[%c0_1, %c0_2] : memref<256x512xbf16, #tpu.memory_space<vmem>>, vector<256x512xbf16>
    %cst = arith.constant dense<0.000000e+00> : vector<1x512xf32>
    %3 = tpu.matmul %1, %2, %cst {dimension_numbers = #tpu.dot_dimension_numbers<[1], [0], [0], [1], [0, 0, 1, 1], [], []>} : vector<1x256xbf16>, vector<256x512xbf16>, vector<1x512xf32> -> vector<1x512xf32>
    %c0_3 = arith.constant 0 : index
    %c0_4 = arith.constant 0 : index
    %4 = vector.load %arg3[%c0_3, %c0_4] : memref<1x512xf32, #tpu.memory_space<vmem>>, vector<1x512xf32>
    %5 = arith.addf %3, %4 : vector<1x512xf32>
    %cst_5 = arith.constant 0.000000e+00 : f32
    %6 = vector.broadcast %cst_5 : f32 to vector<1x512xf32>
    %7 = arith.maximumf %5, %6 : vector<1x512xf32>
    %8 = arith.truncf %7 : vector<1x512xf32> to vector<1x512xbf16>
    %c0_6 = arith.constant 0 : index
    %c0_7 = arith.constant 0 : index
    %9 = vector.load %arg4[%c0_6, %c0_7] : memref<512x128xbf16, #tpu.memory_space<vmem>>, vector<512x128xbf16>
    %cst_8 = arith.constant dense<0.000000e+00> : vector<1x128xf32>
    %10 = tpu.matmul %8, %9, %cst_8 {dimension_numbers = #tpu.dot_dimension_numbers<[1], [0], [0], [1], [0, 0, 1, 1], [], []>} : vector<1x512xbf16>, vector<512x128xbf16>, vector<1x128xf32> -> vector<1x128xf32>
    %c0_9 = arith.constant 0 : index
    %c0_10 = arith.constant 0 : index
    %11 = vector.load %arg5[%c0_9, %c0_10] : memref<1x128xf32, #tpu.memory_space<vmem>>, vector<1x128xf32>
    %12 = arith.addf %10, %11 : vector<1x128xf32>
    %c0_11 = arith.constant 0 : index
    %c0_12 = arith.constant 0 : index
    %13 = vector.load %arg6[%c0_11, %c0_12] : memref<1x128xf32, #tpu.memory_space<vmem>>, vector<1x128xf32>
    tpu.vector_store %arg6[%c0_11, %c0_12], %12 {strides = array<i32>} : memref<1x128xf32, #tpu.memory_space<vmem>>, vector<1x128xf32>,
    return
  }
  func.func @transform_0(%arg0: i32) -> (i32, i32) {
    %c0_i32 = arith.constant 0 : i32
    %c0_i32_0 = arith.constant 0 : i32
    return %arg0, %c0_i32 : i32, i32
  }
  func.func @transform_1(%arg0: i32) -> (i32, i32) {
    %c0_i32 = arith.constant 0 : i32
    %c0_i32_0 = arith.constant 0 : i32
    %c0_i32_1 = arith.constant 0 : i32
    return %c0_i32, %c0_i32_0 : i32, i32
  }
  func.func @transform_2(%arg0: i32) -> (i32, i32) {
    %c0_i32 = arith.constant 0 : i32
    %c0_i32_0 = arith.constant 0 : i32
    %c0_i32_1 = arith.constant 0 : i32
    return %c0_i32, %c0_i32_0 : i32, i32
  }
  func.func @transform_3(%arg0: i32) -> (i32, i32) {
    %c0_i32 = arith.constant 0 : i32
    %c0_i32_0 = arith.constant 0 : i32
    %c0_i32_1 = arith.constant 0 : i32
    return %c0_i32, %c0_i32_0 : i32, i32
  }
  func.func @transform_4(%arg0: i32) -> (i32, i32) {
    %c0_i32 = arith.constant 0 : i32
    %c0_i32_0 = arith.constant 0 : i32
    %c0_i32_1 = arith.constant 0 : i32
    return %c0_i32, %c0_i32_0 : i32, i32
  }
  func.func @transform_5(%arg0: i32) -> (i32, i32) {
    %c0_i32 = arith.constant 0 : i32
    %c0_i32_0 = arith.constant 0 : i32
    return %arg0, %c0_i32 : i32, i32
  }
}

</mosaic_0001>

<bundles_post_ra>
// kernel: embedding_net_forward.1
= control target key start
LH: loop header
LB: loop body
LE: loop exit
PB: predicated region body
PF: predicated region fallthrough
CT: control target
= control target key end

     0   :  { %v23_v36 = vlaneseq  ;;  %s1485_s1 = inlined_call_operand.vmem [shape: bf16[256,512], index: 1, kind: input, shape index: {}]   ;;  %s1486_s0 = inlined_call_operand.vmem [shape: f32[1,256], index: 0, kind: input, shape index: {}]   ;;  %s1487_s3 = inlined_call_operand.vmem [shape: bf16[512,128], index: 3, kind: input, shape index: {}]   ;;  %s1488_s2 = inlined_call_operand.vmem [shape: f32[1,512], index: 2, kind: input, shape index: {}]   ;;  %s1489_s4 = inlined_call_operand.vmem [shape: f32[1,128], index: 4, kind: input, shape index: {}]   ;;  %s1490_s5 = inlined_call_operand.vmem [shape: f32[1,128], index: 5, kind: output, shape index: {}]  }
   0x1   :  { %v1013_v0 = vld [vmem:[%s1485_s1 + $0x4] ss:$16 sps:$4 sm:$0xff]   ;;  %v1015_v1 = vld [vmem:[%s1485_s1 + $0xc] ss:$16 sps:$4 sm:$0xff]   ;;  %v1017_v2 = vld [vmem:[%s1485_s1] ss:$16 sps:$4 sm:$0xff]  }
   0x2   :  { %441 = vmatprep.subr.bf16.mxu0 %v1013_v0  ;;  %v1018_v3 = vld [vmem:[%s1485_s1 + $0x8] ss:$16 sps:$4 sm:$0xff]   ;;  %482 = vmatprep.subr.bf16.mxu1 %v1015_v1  ;;  %v1019_v4 = vld [vmem:[%s1485_s1 + $0x24] ss:$16 sps:$4 sm:$0xff]   ;;  %v1021_v5 = vld [vmem:[%s1485_s1 + $0x2c] ss:$16 sps:$4 sm:$0xff]  }
   0x3   :  { %442 = vmatpush1.bf16.msra.mxu0 %v1017_v2  ;;  %483 = vmatpush1.bf16.msra.mxu1 %v1018_v3  ;;  %v1023_v6 = vld [vmem:[%s1485_s1 + $0x20] ss:$16 sps:$4 sm:$0xff]   ;;  %v1024_v7 = vld [vmem:[%s1485_s1 + $0x28] ss:$16 sps:$4 sm:$0xff]   ;;  %v1025_v8 = vld [vmem:[%s1485_s1 + $0x44] ss:$16 sps:$4 sm:$0xff]  }
   0x4   :  { %443 = vmatprep.subr.bf16.mxu0 %v1019_v4  ;;  %484 = vmatprep.subr.bf16.mxu1 %v1021_v5  ;;  %v1027_v9 = vld [vmem:[%s1485_s1 + $0x4c] ss:$16 sps:$4 sm:$0xff]   ;;  %v1029_v10 = vld [vmem:[%s1485_s1 + $0x40] ss:$16 sps:$4 sm:$0xff]   ;;  %v1030_v11 = vld [vmem:[%s1485_s1 + $0x48] ss:$16 sps:$4 sm:$0xff]  }
   0x5   :  { %v1031_v12 = vld [vmem:[%s1485_s1 + $0x64] ss:$16 sps:$4 sm:$0xff]   ;;  %v1033_v13 = vld [vmem:[%s1485_s1 + $0x6c] ss:$16 sps:$4 sm:$0xff]   ;;  %v1035_v14 = vld [vmem:[%s1485_s1 + $0x60] ss:$16 sps:$4 sm:$0xff]  }
   0x6   :  { %v1036_v15 = vld [vmem:[%s1485_s1 + $0x68] ss:$16 sps:$4 sm:$0xff]   ;;  %v1037_v16 = vld [vmem:[%s1485_s1 + $0x84] ss:$16 sps:$4 sm:$0xff]   ;;  %v1039_v17 = vld [vmem:[%s1485_s1 + $0x8c] ss:$16 sps:$4 sm:$0xff]  }
   0x7   :  { %444 = vmatpush1.bf16.msra.mxu0 %v1023_v6  ;;  %485 = vmatpush1.bf16.msra.mxu1 %v1024_v7  ;;  %v1041_v18 = vld [vmem:[%s1485_s1 + $0x80] ss:$16 sps:$4 sm:$0xff]   ;;  %v1042_v19 = vld [vmem:[%s1485_s1 + $0x88] ss:$16 sps:$4 sm:$0xff]   ;;  %v1043_v20 = vld [vmem:[%s1485_s1 + $0xa4] ss:$16 sps:$4 sm:$0xff]  }
   0x8   :  { %445 = vmatprep.subr.bf16.mxu0 %v1025_v8  ;;  %486 = vmatprep.subr.bf16.mxu1 %v1027_v9  ;;  %v1045_v21 = vld [vmem:[%s1485_s1 + $0xac] ss:$16 sps:$4 sm:$0xff]   ;;  %v1047_v22 = vld [vmem:[%s1485_s1 + $0xa0] ss:$16 sps:$4 sm:$0xff]   ;;  %v1048_v23 = vld [vmem:[%s1485_s1 + $0xa8] ss:$16 sps:$4 sm:$0xff]  }
   0x9   :  { %v1049_v24 = vld [vmem:[%s1485_s1 + $0xc4] ss:$16 sps:$4 sm:$0xff]   ;;  %v1051_v25 = vld [vmem:[%s1485_s1 + $0xcc] ss:$16 sps:$4 sm:$0xff]   ;;  %v1053_v26 = vld [vmem:[%s1485_s1 + $0xc0] ss:$16 sps:$4 sm:$0xff]  }
   0xa   :  { %v1054_v27 = vld [vmem:[%s1485_s1 + $0xc8] ss:$16 sps:$4 sm:$0xff]   ;;  %v1055_v28 = vld [vmem:[%s1485_s1 + $0xe4] ss:$16 sps:$4 sm:$0xff]   ;;  %v1057_v29 = vld [vmem:[%s1485_s1 + $0xec] ss:$16 sps:$4 sm:$0xff]  }
   0xb   :  { %446 = vmatpush1.bf16.msra.mxu0 %v1029_v10  ;;  %487 = vmatpush1.bf16.msra.mxu1 %v1030_v11  ;;  %v1059_v30 = vld [vmem:[%s1485_s1 + $0xe0] ss:$16 sps:$4 sm:$0xff]   ;;  %v1060_v31 = vld [vmem:[%s1485_s1 + $0xe8] ss:$16 sps:$4 sm:$0xff]   ;;  %v1061_v32 = vld [vmem:[%s1485_s1 + $0x104] ss:$16 sps:$4 sm:$0xff]  }
   0xc   :  { %447 = vmatprep.subr.bf16.mxu0 %v1031_v12  ;;  %488 = vmatprep.subr.bf16.mxu1 %v1033_v13  ;;  %v1063_v33 = vld [vmem:[%s1485_s1 + $0x10c] ss:$16 sps:$4 sm:$0xff]   ;;  %v1065_v34 = vld [vmem:[%s1485_s1 + $0x100] ss:$16 sps:$4 sm:$0xff]   ;;  %v1066_v35 = vld [vmem:[%s1485_s1 + $0x108] ss:$16 sps:$4 sm:$0xff]  }
   0xd   :  { %v1067_v37 = vld [vmem:[%s1485_s1 + $0x124] ss:$16 sps:$4 sm:$0xff]   ;;  %v1069_v38 = vld [vmem:[%s1485_s1 + $0x12c] ss:$16 sps:$4 sm:$0xff]   ;;  %v1071_v39 = vld [vmem:[%s1485_s1 + $0x120] ss:$16 sps:$4 sm:$0xff]  }
   0xe   :  { %v1288_v40 = vshrl.u32 %v23_v36, 7  ;;  %v1072_v41 = vld [vmem:[%s1485_s1 + $0x128] ss:$16 sps:$4 sm:$0xff]   ;;  %v1073_v42 = vld [vmem:[%s1485_s1 + $0x144] ss:$16 sps:$4 sm:$0xff]  }
   0xf   :  { %448 = vmatpush1.bf16.msra.mxu0 %v1035_v14  ;;  %489 = vmatpush1.bf16.msra.mxu1 %v1036_v15  ;;  %v1075_v43 = vld [vmem:[%s1485_s1 + $0x14c] ss:$16 sps:$4 sm:$0xff]   ;;  %v1077_v44 = vld [vmem:[%s1485_s1 + $0x140] ss:$16 sps:$4 sm:$0xff]   ;;  %v1078_v45 = vld [vmem:[%s1485_s1 + $0x148] ss:$16 sps:$4 sm:$0xff]  }
  0x10   :  { %449 = vmatprep.subr.bf16.mxu0 %v1037_v16  ;;  %490 = vmatprep.subr.bf16.mxu1 %v1039_v17  ;;  %v29_v46 = vsub.s32 1, %v1288_v40  ;;  %v1079_v47 = vld [vmem:[%s1485_s1 + $0x164] ss:$16 sps:$4 sm:$0xff]   ;;  %v1081_v48 = vld [vmem:[%s1485_s1 + $0x16c] ss:$16 sps:$4 sm:$0xff]   ;;  %v25_v51 = vsub.s32 0, %v1288_v40 }
  0x11   :  { %v1083_v49 = vld [vmem:[%s1485_s1 + $0x160] ss:$16 sps:$4 sm:$0xff]   ;;  %v1084_v52 = vld [vmem:[%s1485_s1 + $0x168] ss:$16 sps:$4 sm:$0xff]   ;;  %v1085_v54 = vld [vmem:[%s1485_s1 + $0x184] ss:$16 sps:$4 sm:$0xff]  }
  0x12   :  { %v21_v50 = vld [vmem:[%s1486_s0] sm:$0x3]  ;;  %v1087_v55 = vld [vmem:[%s1485_s1 + $0x18c] ss:$16 sps:$4 sm:$0xff]   ;;  %v1090_v58 = vld [vmem:[%s1485_s1 + $0x188] ss:$16 sps:$4 sm:$0xff]  }
  0x13   :  { %450 = vmatpush1.bf16.msra.mxu0 %v1041_v18  ;;  %491 = vmatpush1.bf16.msra.mxu1 %v1042_v19  ;;  %v30_v53 = vrot.slane %v21_v50, %v29_v46  ;;  %v1089_v57 = vld [vmem:[%s1485_s1 + $0x180] ss:$16 sps:$4 sm:$0xff]   ;;  %v1091_v59 = vld [vmem:[%s1485_s1 + $0x1a4] ss:$16 sps:$4 sm:$0xff]   ;;  %v1093_v60 = vld [vmem:[%s1485_s1 + $0x1ac] ss:$16 sps:$4 sm:$0xff]   ;;  %v26_v7 = vrot.slane %v21_v50, %v25_v51 }
  0x14   :  { %451 = vmatprep.subr.bf16.mxu0 %v1043_v20  ;;  %492 = vmatprep.subr.bf16.mxu1 %v1045_v21  ;;  %v1095_v61 = vld [vmem:[%s1485_s1 + $0x1a0] ss:$16 sps:$4 sm:$0xff]   ;;  %v1096_v62 = vld [vmem:[%s1485_s1 + $0x1a8] ss:$16 sps:$4 sm:$0xff]   ;;  %v1097_v63 = vld [vmem:[%s1485_s1 + $0x1c4] ss:$16 sps:$4 sm:$0xff]  }
  0x15   :  { %v34_v56 = vpack.c.bf16 %v30_v53, %v30_v53  ;;  %v1099_v0 = vld [vmem:[%s1485_s1 + $0x1cc] ss:$16 sps:$4 sm:$0xff]   ;;  %v1101_v1 = vld [vmem:[%s1485_s1 + $0x1c0] ss:$16 sps:$4 sm:$0xff]   ;;  %v1102_v2 = vld [vmem:[%s1485_s1 + $0x1c8] ss:$16 sps:$4 sm:$0xff]   ;;  %v33_v11 = vpack.c.bf16 %v26_v7, %v26_v7 }
  0x16   :  { %v1103_v3 = vld [vmem:[%s1485_s1 + $0x1e4] ss:$16 sps:$4 sm:$0xff]   ;;  %v1105_v4 = vld [vmem:[%s1485_s1 + $0x1ec] ss:$16 sps:$4 sm:$0xff]   ;;  %v1107_v5 = vld [vmem:[%s1485_s1 + $0x1e0] ss:$16 sps:$4 sm:$0xff]  }
  0x17   :  { %452 = vmatpush1.bf16.msra.mxu0 %v1047_v22  ;;  %493 = vmatpush1.bf16.msra.mxu1 %v1048_v23  ;;  %v1108_v6 = vld [vmem:[%s1485_s1 + $0x1e8] ss:$16 sps:$4 sm:$0xff]   ;;  %v1109_v8 = vld [vmem:[%s1487_s3 + $0x40] sm:$0xff]   ;;  %v1117_v17 = vld [vmem:[%s1487_s3 + $0x50] sm:$0xff]  }
  0x18   :  { %453 = vmatprep.subr.bf16.mxu0 %v1049_v24  ;;  %494 = vmatprep.subr.bf16.mxu1 %v1051_v25  ;;  %v1110_v9 = vld [vmem:[%s1487_s3 + $0xc0] sm:$0xff]   ;;  %v1113_v13 = vld [vmem:[%s1487_s3 + $0x48] sm:$0xff]   ;;  %v1118_v18 = vld [vmem:[%s1487_s3 + $0xd0] sm:$0xff]  }
  0x19   :  { %473 = vmatprep.mubr.bf16.mxu0 %v34_v56  ;;  %514 = vmatprep.mubr.bf16.mxu1 %v34_v56  ;;  %v1111_v10 = vld [vmem:[%s1487_s3] sm:$0xff]   ;;  %v1114_v14 = vld [vmem:[%s1487_s3 + $0xc8] sm:$0xff]   ;;  %v1119_v19 = vld [vmem:[%s1487_s3 + $0x10] sm:$0xff]  }
  0x1a   :  { %v1112_v12 = vld [vmem:[%s1487_s3 + $0x80] sm:$0xff]   ;;  %v1115_v15 = vld [vmem:[%s1487_s3 + $0x8] sm:$0xff]   ;;  %v1120_v20 = vld [vmem:[%s1487_s3 + $0x90] sm:$0xff]  }
  0x1b   :  { %454 = vmatpush1.bf16.msra.mxu0 %v1053_v26  ;;  %495 = vmatpush1.bf16.msra.mxu1 %v1054_v27  ;;  %v1116_v16 = vld [vmem:[%s1487_s3 + $0x88] sm:$0xff]   ;;  %v1121_v21 = vld [vmem:[%s1487_s3 + $0x58] sm:$0xff]   ;;  %v1125_v25 = vld [vmem:[%s1487_s3 + $0x60] sm:$0xff]  }
  0x1c   :  { %455 = vmatprep.subr.bf16.mxu0 %v1055_v28  ;;  %496 = vmatprep.subr.bf16.mxu1 %v1057_v29  ;;  %v1122_v22 = vld [vmem:[%s1487_s3 + $0xd8] sm:$0xff]   ;;  %v1126_v26 = vld [vmem:[%s1487_s3 + $0xe0] sm:$0xff]   ;;  %v1129_v29 = vld [vmem:[%s1487_s3 + $0x68] sm:$0xff]  }
  0x1d   :  { %v1123_v23 = vld [vmem:[%s1487_s3 + $0x18] sm:$0xff]   ;;  %v1127_v27 = vld [vmem:[%s1487_s3 + $0x20] sm:$0xff]   ;;  %v1136_v36 = vld [vmem:[%s1487_s3 + $0xb0] sm:$0xff]  }
  0x1e   :  { %v1124_v24 = vld [vmem:[%s1487_s3 + $0x98] sm:$0xff]   ;;  %v1128_v28 = vld [vmem:[%s1487_s3 + $0xa0] sm:$0xff]  }
  0x1f   :  { %456 = vmatpush1.bf16.msra.mxu0 %v1059_v30  ;;  %497 = vmatpush1.bf16.msra.mxu1 %v1060_v31  ;;  %v1130_v30 = vld [vmem:[%s1487_s3 + $0xe8] sm:$0xff]  }
  0x20   :  { %457 = vmatprep.subr.bf16.mxu0 %v1061_v32  ;;  %498 = vmatprep.subr.bf16.mxu1 %v1063_v33  ;;  %v1131_v31 = vld [vmem:[%s1487_s3 + $0x28] sm:$0xff]   ;;  %v1133_v33 = vld [vmem:[%s1487_s3 + $0x70] sm:$0xff]  }
  0x21   :  { %v1132_v32 = vld [vmem:[%s1487_s3 + $0xa8] sm:$0xff]  }
  0x23   :  { %458 = vmatpush1.bf16.msra.mxu0 %v1065_v34  ;;  %499 = vmatpush1.bf16.msra.mxu1 %v1066_v35  ;;  %v1134_v34 = vld [vmem:[%s1487_s3 + $0xf0] sm:$0xff]  }
  0x24   :  { %459 = vmatprep.subr.bf16.mxu0 %v1067_v37  ;;  %500 = vmatprep.subr.bf16.mxu1 %v1069_v38  ;;  %v1135_v35 = vld [vmem:[%s1487_s3 + $0x30] sm:$0xff]   ;;  %v1137_v37 = vld [vmem:[%s1487_s3 + $0x78] sm:$0xff]  }
  0x25   :  { %v1138_v38 = vld [vmem:[%s1487_s3 + $0xf8] sm:$0xff]  }
  0x27   :  { %460 = vmatpush1.bf16.msra.mxu0 %v1071_v39  ;;  %501 = vmatpush1.bf16.msra.mxu1 %v1072_v41  ;;  %v1139_v39 = vld [vmem:[%s1487_s3 + $0x38] sm:$0xff]  }
  0x28   :  { %461 = vmatprep.subr.bf16.mxu0 %v1073_v42  ;;  %502 = vmatprep.subr.bf16.mxu1 %v1075_v43  ;;  %v1140_v41 = vld [vmem:[%s1487_s3 + $0xb8] sm:$0xff]   ;;  %v431_v42 = vsub.s32 2, %v1288_v40  ;;  %v99_v43 = vld [vmem:[%s1488_s2] sm:$0xf] }
  0x2b   :  { %462 = vmatpush1.bf16.msra.mxu0 %v1077_v44  ;;  %503 = vmatpush1.bf16.msra.mxu1 %v1078_v45  ;;  %v435_v44 = vsub.s32 3, %v1288_v40  ;;  %v424_v45 = vrot.slane %v99_v43, %v25_v51 }
  0x2c   :  { %463 = vmatprep.subr.bf16.mxu0 %v1079_v47  ;;  %504 = vmatprep.subr.bf16.mxu1 %v1081_v48  ;;  %v432_v47 = vrot.slane %v99_v43, %v431_v42  ;;  %v428_v48 = vrot.slane %v99_v43, %v29_v46 }
  0x2f   :  { %464 = vmatpush1.bf16.msra.mxu0 %v1083_v49  ;;  %505 = vmatpush1.bf16.msra.mxu1 %v1084_v52  ;;  %v436_v49 = vrot.slane %v99_v43, %v435_v44 }
  0x30   :  { %465 = vmatprep.subr.bf16.mxu0 %v1085_v54  ;;  %506 = vmatprep.subr.bf16.mxu1 %v1087_v55 }
  0x33   :  { %466 = vmatpush1.bf16.msra.mxu0 %v1089_v57  ;;  %507 = vmatpush1.bf16.msra.mxu1 %v1090_v58 }
  0x34   :  { %467 = vmatprep.subr.bf16.mxu0 %v1091_v59  ;;  %508 = vmatprep.subr.bf16.mxu1 %v1093_v60 }
  0x37   :  { %468 = vmatpush1.bf16.msra.mxu0 %v1095_v61  ;;  %509 = vmatpush1.bf16.msra.mxu1 %v1096_v62 }
  0x38   :  { %469 = vmatprep.subr.bf16.mxu0 %v1097_v63  ;;  %510 = vmatprep.subr.bf16.mxu1 %v1099_v0 }
  0x3b   :  { %470 = vmatpush1.bf16.msra.mxu0 %v1101_v1  ;;  %511 = vmatpush1.bf16.msra.mxu1 %v1102_v2 }
  0x3c   :  { %471 = vmatprep.subr.bf16.mxu0 %v1103_v3  ;;  %512 = vmatprep.subr.bf16.mxu1 %v1105_v4 }
  0x3f   :  { %472 = vmatpush1.bf16.msra.mxu0 %v1107_v5  ;;  %513 = vmatpush1.bf16.msra.mxu1 %v1108_v6  ;;  %v595_v6 = vld [vmem:[%s1489_s4] sm:$0x1] }
  0x40   :  { %969 = vmatprep.subr.bf16.mxu0 %v1109_v8  ;;  %991 = vmatprep.subr.bf16.mxu1 %v1110_v9 }
  0x42   :  { %474 = vmatmul.mubr.bf16.vlgmr.msra.gmra.mrb[0].mxu0 %v33_v11  ;;  %515 = vmatmul.mubr.bf16.vlgmr.msra.gmra.mrb[0].mxu1 %v33_v11 }
  0x43   :  { %970 = vmatpush3.bf16.msra.mxu0 %v1111_v10  ;;  %992 = vmatpush3.bf16.msra.mxu1 %v1112_v12 }
  0x44   :  { %971 = vmatprep.subr.bf16.mxu0 %v1113_v13  ;;  %993 = vmatprep.subr.bf16.mxu1 %v1114_v14 }
  0x47   :  { %972 = vmatpush3.bf16.msra.mxu0 %v1115_v15  ;;  %994 = vmatpush3.bf16.msra.mxu1 %v1116_v16 }
  0x48   :  { %973 = vmatprep.subr.bf16.mxu0 %v1117_v17  ;;  %995 = vmatprep.subr.bf16.mxu1 %v1118_v18 }
  0x4b   :  { %974 = vmatpush3.bf16.msra.mxu0 %v1119_v19  ;;  %996 = vmatpush3.bf16.msra.mxu1 %v1120_v20 }
  0x4c   :  { %975 = vmatprep.subr.bf16.mxu0 %v1121_v21  ;;  %997 = vmatprep.subr.bf16.mxu1 %v1122_v22 }
  0x4f   :  { %976 = vmatpush3.bf16.msra.mxu0 %v1123_v23  ;;  %998 = vmatpush3.bf16.msra.mxu1 %v1124_v24 }
  0x50   :  { %977 = vmatprep.subr.bf16.mxu0 %v1125_v25  ;;  %999 = vmatprep.subr.bf16.mxu1 %v1126_v26 }
  0x53   :  { %978 = vmatpush3.bf16.msra.mxu0 %v1127_v27  ;;  %1000 = vmatpush3.bf16.msra.mxu1 %v1128_v28 }
  0x54   :  { %979 = vmatprep.subr.bf16.mxu0 %v1129_v29  ;;  %1001 = vmatprep.subr.bf16.mxu1 %v1130_v30 }
  0x57   :  { %980 = vmatpush3.bf16.msra.mxu0 %v1131_v31  ;;  %1002 = vmatpush3.bf16.msra.mxu1 %v1132_v32 }
  0x58   :  { %981 = vmatprep.subr.bf16.mxu0 %v1133_v33  ;;  %1003 = vmatprep.subr.bf16.mxu1 %v1134_v34 }
  0x5b   :  { %982 = vmatpush3.bf16.msra.mxu0 %v1135_v35  ;;  %1004 = vmatpush3.bf16.msra.mxu1 %v1136_v36 }
  0x5c   :  { %983 = vmatprep.subr.bf16.mxu0 %v1137_v37  ;;  %1005 = vmatprep.subr.bf16.mxu1 %v1138_v38 }
  0x5f   :  { %984 = vmatpush3.bf16.msra.mxu0 %v1139_v39  ;;  %1006 = vmatpush3.bf16.msra.mxu1 %v1140_v41 }
 0x115   :  { %v475_v50 = vpop.f32.mrb[0].mxu0  ;;  %v516_v52 = vpop.f32.mrb[0].mxu1 }
 0x116   :  { %v476_v53 = vadd.f32 %v475_v50, %v424_v45  ;;  %v517_v54 = vadd.f32 %v516_v52, %v432_v47  ;;  %v477_v55 = vpop.f32.mrb[1].mxu0  ;;  %v518_v56 = vpop.f32.mrb[1].mxu1 }
 0x117   :  { %v478_v57 = vadd.f32 %v477_v55, %v428_v48  ;;  %v519_v58 = vadd.f32 %v518_v56, %v436_v49  ;;  %v479_v59 = vpop.f32.mrb[2].mxu0  ;;  %v520_v60 = vpop.f32.mrb[2].mxu1 }
 0x118   :  { %v523_v61 = vmax.f32 %v476_v53, 0.0  ;;  %v525_v62 = vmax.f32 %v517_v54, 0.0  ;;  %v480_v63 = vpop.f32.mrb[3].mxu0  ;;  %v521_v0 = vpop.f32.mrb[3].mxu1 }
 0x119   :  { %v524_v51 = vmax.f32 %v478_v57, 0.0  ;;  %v526_v1 = vmax.f32 %v519_v58, 0.0 }
 0x11a   :  { %v529_v2 = vpack.c.bf16 %v525_v62, %v525_v62  ;;  %v527_v3 = vpack.c.bf16 %v523_v61, %v523_v61 }
 0x11b   :  { %v528_v40 = vpack.c.bf16 %v524_v51, %v524_v51  ;;  %v530_v46 = vpack.c.bf16 %v526_v1, %v526_v1 }
 0x11d   :  { %820 = vmatprep.mubr.bf16.mxu0 %v528_v40  ;;  %860 = vmatprep.mubr.bf16.mxu1 %v530_v46 }
 0x11e   :  { %821 = vmatmul.mubr.bf16.vlgmr.msra.gmra.mrb[4].mxu0 %v527_v3  ;;  %861 = vmatmul.mubr.bf16.vlgmr.msra.gmra.mrb[4].mxu1 %v529_v2 }
 0x1f1   :  { %v985_v4 = vpop.f32.mrb[4].mxu0  ;;  %v1007_v5 = vpop.f32.mrb[4].mxu1 }
 0x1f2   :  { %v986_v7 = vpop.f32.mrb[5].mxu0  ;;  %v1008_v8 = vpop.f32.mrb[5].mxu1 }
 0x1f3   :  { %v987_v9 = vadd.f32 %v986_v7, %v985_v4  ;;  %v1009_v10 = vadd.f32 %v1008_v8, %v1007_v5  ;;  %v988_v11 = vpop.f32.mrb[6].mxu0  ;;  %v1010_v12 = vpop.f32.mrb[6].mxu1 }
 0x1f4   :  { %v989_v13 = vpop.f32.mrb[7].mxu0  ;;  %v1011_v14 = vpop.f32.mrb[7].mxu1 }
 0x1f5   :  { %v823_v15 = vadd.f32 %v987_v9, %v595_v6 }
 0x1f7   :  { %v863_v16 = vadd.f32 %v1009_v10, %v823_v15 }
 0x1f9   :  { %868 = vst [vmem:[%s1490_s5] sm:$0x1] %v863_v16 }

</bundles_post_ra>
